<compile_context>
chip_gen: v5e
topology: v5e:2x2
jax: 0.10.0
libtpu: 0.0.40
codegen_flags: <defaults>
</compile_context>

<pallas_src>
import functools
import math

import jax
import jax.numpy as jnp
from jax.experimental import pallas as pl
from jax.experimental.pallas import tpu as pltpu

LANE = 128
SUBLANE = 8


def _round_up(x, m):
    return (x + m - 1) // m * m


# ------------------------- Pallas kernel -------------------------

def _embedding_plus_head_kernel(
    x_ref,                            # [TB, IN_PAD]        bf16 (batch tile)
    w0_ref, w1_ref, w2_ref, w3_ref,   # [Kpad_l, Npad_l]    bf16, VMEM-resident
    b_ref,                            # [8, NPAD_MAX]       f32, rows 0..3 = biases
    out_ref,                          # [TB, OUT_PAD]       f32, lane-dense
    *,
    n_pads,                           # static padded output widths per layer
):
    n0, n1, n2, n3 = n_pads
    x = x_ref[...]                                            # already bf16

    # --- embedding_net: Linear -> ReLU -> Linear ---
    h = jnp.dot(x, w0_ref[...], preferred_element_type=jnp.float32)
    h = jnp.maximum(h + b_ref[0:1, :n0], 0.0)                 # bias/ReLU in f32
    emb = jnp.dot(h.astype(jnp.bfloat16), w1_ref[...],
                  preferred_element_type=jnp.float32)
    emb = emb + b_ref[1:2, :n1]

    # --- head: Linear -> ReLU -> Linear ---
    h2 = jnp.dot(emb.astype(jnp.bfloat16), w2_ref[...],
                 preferred_element_type=jnp.float32)
    h2 = jnp.maximum(h2 + b_ref[2:3, :n2], 0.0)
    out = jnp.dot(h2.astype(jnp.bfloat16), w3_ref[...],
                  preferred_element_type=jnp.float32)
    out_ref[...] = (out + b_ref[3:4, :n3]).astype(out_ref.dtype)


# ------------------------- Wrapper -------------------------

def embedding_plus_head(x, params, *, block_b=None):
    """x: [B, IN_DIM] f32; params: dict w0..w3 ([in,out] layout), b0..b3."""
    B, in_dim = x.shape
    dims_in = [params[f"w{l}"].shape[0] for l in range(4)]
    dims_out = [params[f"w{l}"].shape[1] for l in range(4)]
    assert dims_in[0] == in_dim

    # Lane-align all feature dims to multiples of 128.
    in_pad = _round_up(in_dim, LANE)
    n_pads = [_round_up(d, LANE) for d in dims_out]
    k_pads = [in_pad] + n_pads[:-1]
    npad_max = max(n_pads)
    out_dim = dims_out[-1]
    out_pad = n_pads[-1]

    # Batch tile: whole (8-aligned) batch if it's small, else 256-row tiles.
    if block_b is None:
        b8 = _round_up(max(B, 1), SUBLANE)
        block_b = b8 if b8 <= 256 else 256
    b_pad = _round_up(max(B, 1), block_b)
    grid = (b_pad // block_b,)

    # --- pad + cast operands: bf16 MXU operands, single f32 bias buffer ---
    x_p = jnp.zeros((b_pad, in_pad), jnp.bfloat16)
    x_p = x_p.at[:B, :in_dim].set(x.astype(jnp.bfloat16))

    ws = []
    for l in range(4):
        wp = jnp.zeros((k_pads[l], n_pads[l]), jnp.bfloat16)
        wp = wp.at[:dims_in[l], :dims_out[l]].set(
            params[f"w{l}"].astype(jnp.bfloat16))
        ws.append(wp)

    b_all = jnp.zeros((SUBLANE, npad_max), jnp.float32)
    for l in range(4):
        b_all = b_all.at[l, :dims_out[l]].set(
            params[f"b{l}"].reshape(-1).astype(jnp.float32))

    flops = 2 * b_pad * sum(k * n for k, n in zip(k_pads, n_pads))
    bytes_accessed = (x_p.size * 2 + sum(w.size * 2 for w in ws)
                      + b_all.size * 4 + b_pad * out_pad * 4)

    kernel = functools.partial(_embedding_plus_head_kernel,
                               n_pads=tuple(n_pads))

    out_p = pl.pallas_call(
        kernel,
        out_shape=jax.ShapeDtypeStruct((b_pad, out_pad), jnp.float32),
        grid=grid,
        in_specs=[
            pl.BlockSpec((block_b, in_pad), lambda i: (i, 0)),   # x: batch-tiled
            pl.BlockSpec(ws[0].shape, lambda i: (0, 0)),         # weights resident
            pl.BlockSpec(ws[1].shape, lambda i: (0, 0)),
            pl.BlockSpec(ws[2].shape, lambda i: (0, 0)),
            pl.BlockSpec(ws[3].shape, lambda i: (0, 0)),
            pl.BlockSpec(b_all.shape, lambda i: (0, 0)),         # fused biases
        ],
        out_specs=pl.BlockSpec((block_b, out_pad), lambda i: (i, 0)),
        compiler_params=pltpu.CompilerParams(
            dimension_semantics=("parallel",),   # shard batch tiles on v7x's 2 TCs
        ),
        cost_estimate=pl.CostEstimate(
            flops=flops, transcendentals=0, bytes_accessed=bytes_accessed),
    )(x_p, *ws, b_all)

    return out_p[:B, :out_dim]


# ------------------------- Parameter init -------------------------

def _linear_params(key, fan_in, fan_out):
    """PyTorch nn.Linear default init; weight stored as [in, out]."""
    kw, kb = jax.random.split(key)
    bound = 1.0 / math.sqrt(fan_in)
    w = jax.random.uniform(kw, (fan_in, fan_out), jnp.float32, -bound, bound)
    b = jax.random.uniform(kb, (1, fan_out), jnp.float32, -bound, bound)
    return w, b


def make_params(key, in_dim, emb_hid, emb_size, hidden_dims):
    k0, k1, k2, k3 = jax.random.split(key, 4)
    w0, b0 = _linear_params(k0, in_dim, emb_hid)                   # embedding L0
    w1, b1 = _linear_params(k1, emb_hid, emb_size)                 # embedding L1
    w2, b2 = _linear_params(k2, emb_size, hidden_dims[0])          # head L0
    w3, b3 = _linear_params(k3, hidden_dims[0], hidden_dims[1])    # head L1
    return dict(w0=w0, b0=b0, w1=w1, b1=b1, w2=w2, b2=b2, w3=w3, b3=b3)


# ------------------------- Pure-JAX reference -------------------------

def reference_forward(x, p):
    """Mirrors the kernel numerics (bf16 MXU operands, f32 accum/bias/ReLU);
    functionally == EmbeddingPlusHead.forward."""
    bf, f32 = jnp.bfloat16, jnp.float32

    def lin(a, w, b):
        return jnp.dot(a.astype(bf), w.astype(bf),
                       preferred_element_type=f32) + b

    h = jnp.maximum(lin(x, p["w0"], p["b0"]), 0.0)
    emb = lin(h, p["w1"], p["b1"])
    h2 = jnp.maximum(lin(emb, p["w2"], p["b2"]), 0.0)
    return lin(h2, p["w3"], p["b3"])


# ------------------------- Main -------------------------

if __name__ == "__main__":
    BATCH = 300             # exercises two 256-row grid steps incl. padded tail
    IN_DIM = 32             # embedding_net input feature size
    EMB_HID = 48            # embedding_net hidden size
    EMB_SIZE = 64           # embedding_net.embedding_size
    HIDDEN_DIMS = [64, 32]  # head hidden_dims; output dim = HIDDEN_DIMS[-1]

    key = jax.random.PRNGKey(0)
    kx, kp = jax.random.split(key)

    to_embed = jax.random.normal(kx, (BATCH, IN_DIM), jnp.float32)
    params = make_params(kp, IN_DIM, EMB_HID, EMB_SIZE, HIDDEN_DIMS)

    out = jax.block_until_ready(embedding_plus_head(to_embed, params))
    ref = reference_forward(to_embed, params)

    assert out.shape == (BATCH, HIDDEN_DIMS[-1]), out.shape
    assert jnp.allclose(out, ref, atol=2e-3, rtol=2e-3), (
        "mismatch vs reference, max abs diff = "
        + str(float(jnp.max(jnp.abs(out - ref)))))

    print("KERNEL_OK")
</pallas_src>

<mosaic_0001>
module attributes {stable_mosaic.version = 11 : i64} {
  func.func @_embedding_plus_head_kernel(%arg0: i32, %arg1: memref<256x128xbf16, #tpu.memory_space<vmem>>, %arg2: memref<128x128xbf16, #tpu.memory_space<vmem>>, %arg3: memref<128x128xbf16, #tpu.memory_space<vmem>>, %arg4: memref<128x128xbf16, #tpu.memory_space<vmem>>, %arg5: memref<128x128xbf16, #tpu.memory_space<vmem>>, %arg6: memref<8x128xf32, #tpu.memory_space<vmem>>, %arg7: memref<256x128xf32, #tpu.memory_space<vmem>>) attributes {dimension_semantics = [#tpu.dimension_semantics<parallel>], iteration_bounds = array<i64: 2>, scalar_prefetch = 0 : i64, scratch_operands = 0 : i64, tpu.core_type = #tpu.core_type<tc>, window_params = [{transform_indices = @transform_0, window_bounds = array<i64: 256, 128>}, {pipeline_mode = #tpu.pipeline_mode<synchronous>, transform_indices = @transform_1, window_bounds = array<i64: 128, 128>}, {pipeline_mode = #tpu.pipeline_mode<synchronous>, transform_indices = @transform_2, window_bounds = array<i64: 128, 128>}, {pipeline_mode = #tpu.pipeline_mode<synchronous>, transform_indices = @transform_3, window_bounds = array<i64: 128, 128>}, {pipeline_mode = #tpu.pipeline_mode<synchronous>, transform_indices = @transform_4, window_bounds = array<i64: 128, 128>}, {pipeline_mode = #tpu.pipeline_mode<synchronous>, transform_indices = @transform_5, window_bounds = array<i64: 8, 128>}, {transform_indices = @transform_6, window_bounds = array<i64: 256, 128>}]} {
    %c0 = arith.constant 0 : index
    %c0_0 = arith.constant 0 : index
    %0 = vector.load %arg1[%c0, %c0_0] : memref<256x128xbf16, #tpu.memory_space<vmem>>, vector<256x128xbf16>
    %c0_1 = arith.constant 0 : index
    %c0_2 = arith.constant 0 : index
    %1 = vector.load %arg2[%c0_1, %c0_2] : memref<128x128xbf16, #tpu.memory_space<vmem>>, vector<128x128xbf16>
    %cst = arith.constant dense<0.000000e+00> : vector<256x128xf32>
    %2 = tpu.matmul %0, %1, %cst {dimension_numbers = #tpu.dot_dimension_numbers<[1], [0], [0], [1], [0, 0, 1, 1], [], []>} : vector<256x128xbf16>, vector<128x128xbf16>, vector<256x128xf32> -> vector<256x128xf32>
    %c0_3 = arith.constant 0 : index
    %c0_4 = arith.constant 0 : index
    %3 = vector.load %arg6[%c0_3, %c0_4] : memref<8x128xf32, #tpu.memory_space<vmem>>, vector<1x128xf32>
    %4 = vector.broadcast %3 : vector<1x128xf32> to vector<256x128xf32>
    %5 = arith.addf %2, %4 : vector<256x128xf32>
    %cst_5 = arith.constant 0.000000e+00 : f32
    %6 = vector.broadcast %cst_5 : f32 to vector<256x128xf32>
    %7 = arith.maximumf %5, %6 : vector<256x128xf32>
    %8 = arith.truncf %7 : vector<256x128xf32> to vector<256x128xbf16>
    %c0_6 = arith.constant 0 : index
    %c0_7 = arith.constant 0 : index
    %9 = vector.load %arg3[%c0_6, %c0_7] : memref<128x128xbf16, #tpu.memory_space<vmem>>, vector<128x128xbf16>
    %cst_8 = arith.constant dense<0.000000e+00> : vector<256x128xf32>
    %10 = tpu.matmul %8, %9, %cst_8 {dimension_numbers = #tpu.dot_dimension_numbers<[1], [0], [0], [1], [0, 0, 1, 1], [], []>} : vector<256x128xbf16>, vector<128x128xbf16>, vector<256x128xf32> -> vector<256x128xf32>
    %c1 = arith.constant 1 : index
    %c0_9 = arith.constant 0 : index
    %11 = vector.load %arg6[%c1, %c0_9] : memref<8x128xf32, #tpu.memory_space<vmem>>, vector<1x128xf32>
    %12 = vector.broadcast %11 : vector<1x128xf32> to vector<256x128xf32>
    %13 = arith.addf %10, %12 : vector<256x128xf32>
    %14 = arith.truncf %13 : vector<256x128xf32> to vector<256x128xbf16>
    %c0_10 = arith.constant 0 : index
    %c0_11 = arith.constant 0 : index
    %15 = vector.load %arg4[%c0_10, %c0_11] : memref<128x128xbf16, #tpu.memory_space<vmem>>, vector<128x128xbf16>
    %cst_12 = arith.constant dense<0.000000e+00> : vector<256x128xf32>
    %16 = tpu.matmul %14, %15, %cst_12 {dimension_numbers = #tpu.dot_dimension_numbers<[1], [0], [0], [1], [0, 0, 1, 1], [], []>} : vector<256x128xbf16>, vector<128x128xbf16>, vector<256x128xf32> -> vector<256x128xf32>
    %c2 = arith.constant 2 : index
    %c0_13 = arith.constant 0 : index
    %17 = vector.load %arg6[%c2, %c0_13] : memref<8x128xf32, #tpu.memory_space<vmem>>, vector<1x128xf32>
    %18 = vector.broadcast %17 : vector<1x128xf32> to vector<256x128xf32>
    %19 = arith.addf %16, %18 : vector<256x128xf32>
    %cst_14 = arith.constant 0.000000e+00 : f32
    %20 = vector.broadcast %cst_14 : f32 to vector<256x128xf32>
    %21 = arith.maximumf %19, %20 : vector<256x128xf32>
    %22 = arith.truncf %21 : vector<256x128xf32> to vector<256x128xbf16>
    %c0_15 = arith.constant 0 : index
    %c0_16 = arith.constant 0 : index
    %23 = vector.load %arg5[%c0_15, %c0_16] : memref<128x128xbf16, #tpu.memory_space<vmem>>, vector<128x128xbf16>
    %cst_17 = arith.constant dense<0.000000e+00> : vector<256x128xf32>
    %24 = tpu.matmul %22, %23, %cst_17 {dimension_numbers = #tpu.dot_dimension_numbers<[1], [0], [0], [1], [0, 0, 1, 1], [], []>} : vector<256x128xbf16>, vector<128x128xbf16>, vector<256x128xf32> -> vector<256x128xf32>
    %c3 = arith.constant 3 : index
    %c0_18 = arith.constant 0 : index
    %25 = vector.load %arg6[%c3, %c0_18] : memref<8x128xf32, #tpu.memory_space<vmem>>, vector<1x128xf32>
    %26 = vector.broadcast %25 : vector<1x128xf32> to vector<256x128xf32>
    %27 = arith.addf %24, %26 : vector<256x128xf32>
    %c0_19 = arith.constant 0 : index
    %c0_20 = arith.constant 0 : index
    %28 = vector.load %arg7[%c0_19, %c0_20] : memref<256x128xf32, #tpu.memory_space<vmem>>, vector<256x128xf32>
    tpu.vector_store %arg7[%c0_19, %c0_20], %27 {strides = array<i32>} : memref<256x128xf32, #tpu.memory_space<vmem>>, vector<256x128xf32>,
    return
  }
  func.func @transform_0(%arg0: i32) -> (i32, i32) {
    %c0_i32 = arith.constant 0 : i32
    %c0_i32_0 = arith.constant 0 : i32
    return %arg0, %c0_i32 : i32, i32
  }
  func.func @transform_1(%arg0: i32) -> (i32, i32) {
    %c0_i32 = arith.constant 0 : i32
    %c0_i32_0 = arith.constant 0 : i32
    %c0_i32_1 = arith.constant 0 : i32
    return %c0_i32, %c0_i32_0 : i32, i32
  }
  func.func @transform_2(%arg0: i32) -> (i32, i32) {
    %c0_i32 = arith.constant 0 : i32
    %c0_i32_0 = arith.constant 0 : i32
    %c0_i32_1 = arith.constant 0 : i32
    return %c0_i32, %c0_i32_0 : i32, i32
  }
  func.func @transform_3(%arg0: i32) -> (i32, i32) {
    %c0_i32 = arith.constant 0 : i32
    %c0_i32_0 = arith.constant 0 : i32
    %c0_i32_1 = arith.constant 0 : i32
    return %c0_i32, %c0_i32_0 : i32, i32
  }
  func.func @transform_4(%arg0: i32) -> (i32, i32) {
    %c0_i32 = arith.constant 0 : i32
    %c0_i32_0 = arith.constant 0 : i32
    %c0_i32_1 = arith.constant 0 : i32
    return %c0_i32, %c0_i32_0 : i32, i32
  }
  func.func @transform_5(%arg0: i32) -> (i32, i32) {
    %c0_i32 = arith.constant 0 : i32
    %c0_i32_0 = arith.constant 0 : i32
    %c0_i32_1 = arith.constant 0 : i32
    return %c0_i32, %c0_i32_0 : i32, i32
  }
  func.func @transform_6(%arg0: i32) -> (i32, i32) {
    %c0_i32 = arith.constant 0 : i32
    %c0_i32_0 = arith.constant 0 : i32
    return %arg0, %c0_i32 : i32, i32
  }
}

</mosaic_0001>

<bundles_post_ra>
// kernel: tpu_custom_call.1
= control target key start
LH: loop header
LB: loop body
LE: loop exit
PB: predicated region body
PF: predicated region fallthrough
CT: control target
= control target key end

     0   :  { %11 = vsyncpa [#allocation3], 0  ;;  %s2434_s0 = inlined_call_operand.hbm [shape: bf16[512,128], index: 0, kind: input, shape index: {}]   ;;  %s2435_s1 = inlined_call_operand.hbm [shape: bf16[128,128], index: 1, kind: input, shape index: {}]   ;;  %s2436_s2 = inlined_call_operand.hbm [shape: bf16[128,128], index: 2, kind: input, shape index: {}]   ;;  %s2437_s3 = inlined_call_operand.hbm [shape: bf16[128,128], index: 3, kind: input, shape index: {}]   ;;  %s2438_s4 = inlined_call_operand.hbm [shape: bf16[128,128], index: 4, kind: input, shape index: {}]   ;;  %s2439_s5 = inlined_call_operand.hbm [shape: f32[8,128], index: 5, kind: input, shape index: {}]   ;;  %s2440_s6 = inlined_call_operand.hbm [shape: f32[512,128], index: 6, kind: output, shape index: {}]  }
   0x1   :  { %13 = vsyncpa [#allocation3 + $0x1], 0 }
   0x2   :  { %14 = vsyncpa [#allocation6], 0 }
   0x3   :  { %15 = vsyncpa [#allocation9], 0 }
   0x4   :  { %16 = vsyncpa [#allocation12], 0 }
   0x5   :  { %17 = vsyncpa [#allocation4], 0 }
   0x6   :  { %19 = vsyncpa [#allocation4 + $0x1], 0  ;;  %s2059_s21 = smov 0   ;;  %s2061_s22 = smov 0  }
   0x7   :  { %s2063_s23 = smov 0   ;;  %s2065_s24 = smov 0  }
   0x8 LB: > { %s198_s27 = sshll.u32 %s2435_s1, 4  ;;  %s2083_s28 = sadd.s32 4294967295, %s2013_s24   ;;  %s2013_s24 = sphi %s2065_s24, %s2455_s24   ;;  %s2009_s23 = sphi %s2063_s23, %s2454_s23   ;;  %s2005_s22 = sphi %s2061_s22, %s2453_s22   ;;  %s2001_s21 = sphi %s2059_s21, %s2452_s21   ;;  %s199_s27 = int_to_ptr.hbm [resolvable:$true] %s198_s27 }
   0x9   : > { %p1385_p0 = scmp.ge.s32.totalorder %s2013_s24, 1  ;;  %p46_p1 = scmp.eq.s32.totalorder %s2083_s28, 0 }
   0xa   : > { %p187_p2 = scmp.lt.s32.totalorder %s2013_s24, 3  ;;  %s2015_s30 = smov [#allocation5]  }
   0xb   : > { %s200_s7 = sshll.u32 %s2015_s30, 4  ;;  %s226_s10 = sshll.u32 %s2437_s3, 4  ;;  %s201_s7 = int_to_ptr.vmem [resolvable:$true] %s200_s7  ;;  %s227_s10 = int_to_ptr.hbm [resolvable:$true] %s226_s10 }
   0xc   : > { %p2088_p3 = pnand %p1385_p0, %p187_p2  ;;  %s212_s14 = sshll.u32 %s2436_s2, 4  ;;  %s213_s14 = int_to_ptr.hbm [resolvable:$true] %s212_s14 }
   0xd   : > { %s2016_s15 = smov [#allocation8]   ;;  %s2441_s17 = smov 64  }
   0xe   : > { %p1674_p4 = pneg %p2088_p3  ;;  %s228_s16 = sshll.u32 %s2016_s15, 4  ;;  %s229_s16 = int_to_ptr.vmem [resolvable:$true] %s228_s16 }
   0xf   : > { %s2442_s18 = smov 4   ;;  %s240_s25 = sshll.u32 %s2438_s4, 4  ;;  %s241_s25 = int_to_ptr.hbm [resolvable:$true] %s240_s25 }
  0x10   : > { %p2100_p6 = pnand %p1674_p4, %p46_p1  ;;  %s2019_s26 = smov [#allocation7]  }
  0x11   : > { %s214_s30 = sshll.u32 %s2019_s26, 4  ;;  %s2021_s12 = smov [#allocation11]   ;;  %s215_s30 = int_to_ptr.vmem [resolvable:$true] %s214_s30 }
  0x12   : > { %1677 = dma.hbm_to_vmem [thread:$0]  (!%p2100_p6), %s199_s27, 1024, %s201_s7, [#allocation6], %s2441_s17, %s2441_s17, %s2442_s18  }
  0x13   : > { %1683 = dma.hbm_to_vmem [thread:$0]  (!%p2100_p6), %s227_s10, 1024, %s229_s16, [#allocation9], %s2441_s17, %s2441_s17, %s2442_s18  }
  0x14   : > { %1680 = dma.hbm_to_vmem [thread:$0]  (!%p2100_p6), %s213_s14, 1024, %s215_s30, [#allocation6], %s2441_s17, %s2441_s17, %s2442_s18  }
  0x15   : > { %s2020_s27 = smov [#allocation10]   ;;  %s255_s10 = sshll.u32 %s2439_s5, 4  ;;  %s256_s10 = int_to_ptr.hbm [resolvable:$true] %s255_s10 }
  0x16   : > { %s242_s7 = sshll.u32 %s2020_s27, 4  ;;  %s257_s13 = sshll.u32 %s2021_s12, 4  ;;  %s243_s7 = int_to_ptr.vmem [resolvable:$true] %s242_s7  ;;  %s258_s13 = int_to_ptr.vmem [resolvable:$true] %s257_s13 }
  0x17   : > { %1686 = dma.hbm_to_vmem [thread:$0]  (!%p2100_p6), %s241_s25, 1024, %s243_s7, [#allocation9], %s2441_s17, %s2441_s17, %s2442_s18  }
  0x18   : > { %1689 = dma.hbm_to_vmem [thread:$0]  (!%p2100_p6), %s256_s10, 128, %s258_s13, [#allocation12]  }
  0x19   : > { %s1384_s14 = sadd.s32 4294967294, %s2013_s24   ;;  %s2137_s15 = sadd.s32 1, %s2013_s24  }
  0x1a   : > { %s32_s16 = sadd.s32 1, %s2009_s23  ;;  %s29_s19 = ssub.s32 %s2013_s24, %s2137_s15 }
  0x1b   : > { %p39_p7 = scmp.ne.s32.totalorder %s2009_s23, %s2005_s22  ;;  %p30_p8 = scmp.eq.s32.totalorder %s29_s19, 0 }
  0x1c   : > { %p40_p9 = scmp.eq.s32.totalorder %s2013_s24, 0  ;;  %p45_p10 = scmp.ne.s32.totalorder %s2005_s22, %s2001_s21 }
  0x1d   : > { %p174_p11 = scmp.eq.s32.totalorder %s2083_s28, 1  ;;  %p180_p0 = scmp.eq.s32.totalorder %s1384_s14, 1 }
  0x1e   : > { %s2149_s20 = scalar_select %p30_p8, %s2009_s23, %s32_s16  }
  0x1f   : > { %p2153_p12 = por %p46_p1, %p45_p10  ;;  %p2157_p13 = por %p174_p11, %p39_p7 }
  0x20   : > { %p41_p2 = por %p40_p9, %p39_p7  ;;  %s268_s26 = sand.u32 1, %s2009_s23  }
  0x21   : > { %p2162_p4 = por %p180_p0, %p45_p10  ;;  %p1703_p6 = scmp.lt.s32.totalorder %s2013_s24, 2 }
  0x22   : > { %s1392_s27 = sshll.u32 %s268_s26, 7  ;;  %s1600_s7 = sshll.u32 %s2013_s24, 7 }
  0x23   : > { %s277_s10 = scalar_lea.hbm %s2434_s0, %s1600_s7  ;;  %s272_s13 = scalar_lea.vmem [#allocation2], %s1392_s27 }
  0x24   : > { %s278_s12 = sshll.u32 %s277_s10, 4  ;;  %s280_s16 = sshll.u32 %s272_s13, 4  ;;  %s279_s12 = int_to_ptr.hbm [resolvable:$true] %s278_s12  ;;  %s281_s16 = int_to_ptr.vmem [resolvable:$true] %s280_s16 }
  0x25   : > { %p2171_p8 = pnand %p1703_p6, %p41_p2  ;;  %s269_s19 = scalar_lea.sflag [#allocation3], %s268_s26 }
  0x26   : > { %s1905_s17 = sshra.s32 %s279_s12, 4  ;;  %s1912_s27 = scalar_lea.hbm %s2434_s0, 256  ;;  %s1906_s17 = int_to_ptr.hbm [resolvable:$true] %s1905_s17 }
  0x27   : > { %s1907_s18 = scalar_lea.hbm %s1906_s17, 128  ;;  %p1909_p9 = pneg %p2171_p8 }
  0x28   : > { %p1908_p7 = scmp.ne.s32.totalorder %s1906_s17, %s1907_s18  ;;  %p1913_p0 = scmp.lt.s32.totalorder %s1906_s17, %s2434_s0 }
  0x29   : > { %p1914_p2 = scmp.lt.s32.totalorder %s1912_s27, %s1907_s18 }
  0x2a   : > { %p1910_p10 = pnand %p1909_p9, %p1908_p7 }
  0x2b   : > { %p1915_p6 = por %p1914_p2, %p1913_p0 }
  0x2c   : > { %p1911_p11 = pneg %p1910_p10 }
  0x2e   : > { %p1916_p5 = pnand %p1915_p6, %p1911_p11 }
  0x30   : > { %1919 = shalt.err (!%p1916_p5)
}
  0x31   : > { %s2449_s26 = smov 4   ;;  %s2450_s13 = smov 64  }
  0x32   : > { %1693 = dma.hbm_to_vmem [thread:$0]  (!%p2171_p8), %s279_s12, 2048, %s281_s16, %s269_s19, %s2450_s13, %s2450_s13, %s2449_s26  }
  0x33   : > { %292 = sbr.rel (%p2088_p3) target bundleno = 905 (0x389), region = 44  ;;  %s2191_s7 = sand.u32 (!%p2088_p3), 1, %s2005_s22  }
  0x34   : > { %s1396_s17 = sshll.u32 (!%p2088_p3), %s2191_s7, 7  ;;  %s295_s18 = scalar_lea.sflag (!%p2088_p3), [#allocation3], %s2191_s7 }
  0x35   : > { %s2195_s8 = scalar_lea.vmem (!%p2088_p3), [#allocation2], %s1396_s17 }
  0x38   : > { %1980 = dma.done.wait (%p2153_p12), %s295_s18, 2048  }
  0x39   : > { %1982 = vsyncadd (%p2153_p12), %s295_s18, 4294965248 }
  0x3a   : > { %1984 = dma.done.wait (%p46_p1), [#allocation6], 2048  }
  0x3b   : > { %1986 = vsyncadd (%p46_p1), [#allocation6], 4294965248 }
  0x3c   : > { %1988 = dma.done.wait (%p46_p1), [#allocation9], 2048  }
  0x3d   : > { %1990 = vsyncadd (%p46_p1), [#allocation9], 4294965248 }
  0x3e   : > { %1992 = dma.done.wait (%p46_p1), [#allocation12], 128  }
  0x3f   : > { %1994 = vsyncadd (%p46_p1), [#allocation12], 4294967168  ;;  %v1624_v0 = vld [vmem:[#allocation5 + $0x38] sm:$0xff]  ;;  %v1623_v1 = vld [vmem:[#allocation5 + $0x30] sm:$0xff]  ;;  %s1402_s29 = sshll.u32 %s2191_s7, 8  ;;  %s1649_s12 = sshll.u32 %s2083_s28, 8 }
  0x40   : > { %549 = vmatpush.bf16.msra.mxu0 %v1624_v0  ;;  %v1622_v2 = vld [vmem:[#allocation5 + $0x28] sm:$0xff]  ;;  %v1621_v3 = vld [vmem:[#allocation5 + $0x20] sm:$0xff]  ;;  %v1620_v4 = vld [vmem:[#allocation5 + $0x18] sm:$0xff]  ;;  %s2321_s11 = scalar_lea.vmem [#allocation13], %s1402_s29  ;;  %s1259_s19 = scalar_lea.hbm %s2440_s6, %s1649_s12 }
  0x41   : > { %v1619_v5 = vld [vmem:[#allocation5 + $0x10] sm:$0xff]  ;;  %v1618_v6 = vld [vmem:[#allocation5 + $0x8] sm:$0xff]  ;;  %v1617_v7 = vld [vmem:[#allocation5] sm:$0xff]  ;;  %s1260_s27 = sshll.u32 %s2321_s11, 4  ;;  %s1262_s9 = sshll.u32 %s1259_s19, 4  ;;  %s1261_s27 = int_to_ptr.vmem [resolvable:$true] %s1260_s27  ;;  %s1263_s9 = int_to_ptr.hbm [resolvable:$true] %s1262_s9 }
  0x42   : > { %v1601_v8 = vld [vmem:[%s2195_s8] sm:$0xff]  ;;  %v1602_v9 = vld [vmem:[%s2195_s8 + $0x8] sm:$0xff]  ;;  %v1603_v10 = vld [vmem:[%s2195_s8 + $0x10] sm:$0xff]  ;;  %s1248_s10 = scalar_lea.sflag [#allocation4], %s2191_s7  ;;  %s1949_s26 = sshra.s32 %s1263_s9, 4  ;;  %s1950_s26 = int_to_ptr.hbm [resolvable:$true] %s1949_s26 }
  0x43   : > { %v1604_v11 = vld [vmem:[%s2195_s8 + $0x18] sm:$0xff]  ;;  %v1605_v12 = vld [vmem:[%s2195_s8 + $0x20] sm:$0xff]  ;;  %v1606_v14 = vld [vmem:[%s2195_s8 + $0x28] sm:$0xff]  ;;  %s1951_s28 = scalar_lea.hbm %s1950_s26, 256  ;;  %s1955_s18 = scalar_lea.hbm %s2440_s6, 512 }
  0x44   : > { %550 = vmatpush.bf16.msra.mxu0 %v1623_v1  ;;  %v1632_v13 = vld [vmem:[#allocation7 + $0x38] sm:$0xff]  ;;  %v1631_v15 = vld [vmem:[#allocation7 + $0x30] sm:$0xff]  ;;  %v1630_v16 = vld [vmem:[#allocation7 + $0x28] sm:$0xff]  ;;  %p1952_p1 = scmp.ne.s32.totalorder %s1950_s26, %s1951_s28  ;;  %p1956_p12 = scmp.lt.s32.totalorder %s1950_s26, %s2440_s6 }
  0x45   : > { %752 = vmatpush.bf16.msra.mxu1 %v1632_v13  ;;  %v1629_v17 = vld [vmem:[#allocation7 + $0x20] sm:$0xff]  ;;  %v1628_v18 = vld [vmem:[#allocation7 + $0x18] sm:$0xff]  ;;  %v1607_v19 = vld [vmem:[%s2195_s8 + $0x30] sm:$0xff]  ;;  %p1957_p8 = scmp.lt.s32.totalorder %s1955_s18, %s1951_s28 }
  0x46   : > { %v1627_v20 = vld [vmem:[#allocation7 + $0x10] sm:$0xff]  ;;  %v1626_v21 = vld [vmem:[#allocation7 + $0x8] sm:$0xff]  ;;  %v1625_v22 = vld [vmem:[#allocation7] sm:$0xff]  ;;  %p1953_p3 = pnand %p1952_p1, %p2157_p13 }
  0x47   : > { %v1608_v23 = vld [vmem:[%s2195_s8 + $0x38] sm:$0xff]  ;;  %v1609_v24 = vld [vmem:[%s2195_s8 + $0x40] sm:$0xff]  ;;  %v1610_v33 = vld [vmem:[%s2195_s8 + $0x48] sm:$0xff]  ;;  %p1958_p7 = por %p1957_p8, %p1956_p12 }
  0x48   : > { %551 = vmatpush.bf16.msra.mxu0 %v1622_v2  ;;  %v2222_v26 = vld [vmem:[#allocation11] ss:$0 sm:$0xff]  ;;  %v1611_v41 = vld [vmem:[%s2195_s8 + $0x50] sm:$0xff]  ;;  %v1612_v49 = vld [vmem:[%s2195_s8 + $0x58] sm:$0xff]  ;;  %p1954_p5 = pneg %p1953_p3 }
  0x49   : > { %753 = vmatpush.bf16.msra.mxu1 %v1631_v15  ;;  %v1613_v57 = vld [vmem:[%s2195_s8 + $0x60] sm:$0xff]  ;;  %v1614_v1 = vld [vmem:[%s2195_s8 + $0x68] sm:$0xff] }
  0x4a   : > { %v1638_v13 = vld [vmem:[#allocation8 + $0x28] sm:$0xff]  ;;  %p1959_p9 = pnand %p1958_p7, %p1954_p5 }
  0x4c   : > { %552 = vmatpush.bf16.msra.mxu0 %v1621_v3 }
  0x4d   : > { %754 = vmatpush.bf16.msra.mxu1 %v1630_v16 }
  0x50   : > { %553 = vmatpush.bf16.msra.mxu0 %v1620_v4 }
  0x51   : > { %755 = vmatpush.bf16.msra.mxu1 %v1629_v17  ;;  %v1636_v17 = vld [vmem:[#allocation8 + $0x18] sm:$0xff] }
  0x54   : > { %554 = vmatpush.bf16.msra.mxu0 %v1619_v5  ;;  %v1640_v5 = vld [vmem:[#allocation8 + $0x38] sm:$0xff] }
  0x55   : > { %756 = vmatpush.bf16.msra.mxu1 %v1628_v18  ;;  %923 = vmatpush.bf16.msra.mxu2 %v1640_v5 }
  0x58   : > { %555 = vmatpush.bf16.msra.mxu0 %v1618_v6 }
  0x59   : > { %757 = vmatpush.bf16.msra.mxu1 %v1627_v20 }
  0x5c   : > { %556 = vmatpush.bf16.msra.mxu0 %v1617_v7 }
  0x5d   : > { %758 = vmatpush.bf16.msra.mxu1 %v1626_v21  ;;  %v1635_v21 = vld [vmem:[#allocation8 + $0x10] sm:$0xff] }
  0x5f   : > { %557 = vmatmul.bf16.vlgmr.msra.gmra.mxu0 %v1601_v8 }
  0x61   : > { %759 = vmatpush.bf16.msra.mxu1 %v1625_v22 }
  0x6f   : > { %562 = vmatmul.bf16.gmra.mxu0 %v1602_v9  ;;  %v1639_v9 = vld [vmem:[#allocation8 + $0x30] sm:$0xff] }
  0x70   : > { %924 = vmatpush.bf16.msra.mxu2 %v1639_v9 }
  0x74   : > { %925 = vmatpush.bf16.msra.mxu2 %v1638_v13 }
  0x7f   : > { %567 = vmatmul.bf16.gmra.mxu0 %v1603_v10 }
  0x8f   : > { %572 = vmatmul.bf16.gmra.mxu0 %v1604_v11  ;;  %v1615_v11 = vld [vmem:[%s2195_s8 + $0x70] sm:$0xff] }
  0x9f   : > { %577 = vmatmul.bf16.gmra.mxu0 %v1605_v12 }
  0xaf   : > { %582 = vmatmul.bf16.gmra.mxu0 %v1606_v14  ;;  %v1637_v14 = vld [vmem:[#allocation8 + $0x20] sm:$0xff] }
  0xb0   : > { %926 = vmatpush.bf16.msra.mxu2 %v1637_v14 }
  0xb4   : > { %927 = vmatpush.bf16.msra.mxu2 %v1636_v17 }
  0xb8   : > { %928 = vmatpush.bf16.msra.mxu2 %v1635_v21 }
  0xbf   : > { %587 = vmatmul.bf16.gmra.mxu0 %v1607_v19 }
  0xcf   : > { %592 = vmatmul.bf16.gmra.mxu0 %v1608_v23  ;;  %v1616_v23 = vld [vmem:[%s2195_s8 + $0x78] sm:$0xff] }
  0xdc   : > { %v558_v25 = vpop.f32.mrf.mxu0 }
  0xdd   : > { %v559_v27 = vadd.f32 %v2222_v26, %v558_v25  ;;  %v1634_v25 = vld [vmem:[#allocation8 + $0x8] sm:$0xff] }
  0xde   : > { %929 = vmatpush.bf16.msra.mxu2 %v1634_v25 }
  0xdf   : > { %597 = vmatmul.bf16.gmra.mxu0 %v1609_v24  ;;  %v638_v30 = vmax.f32 %v559_v27, 0.0  ;;  %v1633_v27 = vld [vmem:[#allocation8] sm:$0xff] }
  0xe2   : > { %930 = vmatpush.bf16.msra.mxu2 %v1633_v27 }
  0xe4   : > { %v560_v28 = vpop.f32.mrf.mxu0 }
  0xe5   : > { %v561_v29 = vadd.f32 %v2222_v26, %v560_v28 }
  0xe7   : > { %v639_v31 = vmax.f32 %v561_v29, 0.0 }
  0xe9   : > { %v670_v32 = vpack.c.bf16 %v639_v31, %v638_v30 }
  0xeb   : > { %760 = vmatmul.bf16.vlgmr.msra.gmra.mxu1 %v670_v32 }
  0xec   : > { %v563_v34 = vpop.f32.mrf.mxu0 }
  0xed   : > { %v564_v35 = vadd.f32 %v2222_v26, %v563_v34 }
  0xef   : > { %602 = vmatmul.bf16.gmra.mxu0 %v1610_v33  ;;  %v640_v38 = vmax.f32 %v564_v35, 0.0 }
  0xf4   : > { %v565_v36 = vpop.f32.mrf.mxu0 }
  0xf5   : > { %v566_v37 = vadd.f32 %v2222_v26, %v565_v36 }
  0xf7   : > { %v641_v39 = vmax.f32 %v566_v37, 0.0 }
  0xf9   : > { %v671_v40 = vpack.c.bf16 %v641_v39, %v640_v38 }
  0xfb   : > { %765 = vmatmul.bf16.gmra.mxu1 %v671_v40 }
  0xfc   : > { %v568_v42 = vpop.f32.mrf.mxu0 }
  0xfd   : > { %v569_v43 = vadd.f32 %v2222_v26, %v568_v42 }
  0xff   : > { %607 = vmatmul.bf16.gmra.mxu0 %v1611_v41  ;;  %v642_v46 = vmax.f32 %v569_v43, 0.0  ;;  %v2249_v43 = vld [vmem:[#allocation11 + $0x1] ss:$0 sm:$0xff] }
 0x104   : > { %v570_v44 = vpop.f32.mrf.mxu0 }
 0x105   : > { %v571_v45 = vadd.f32 %v2222_v26, %v570_v44 }
 0x107   : > { %v643_v47 = vmax.f32 %v571_v45, 0.0 }
 0x109   : > { %v672_v48 = vpack.c.bf16 %v643_v47, %v642_v46 }
 0x10b   : > { %770 = vmatmul.bf16.gmra.mxu1 %v672_v48 }
 0x10c   : > { %v573_v50 = vpop.f32.mrf.mxu0 }
 0x10d   : > { %v574_v51 = vadd.f32 %v2222_v26, %v573_v50 }
 0x10f   : > { %612 = vmatmul.bf16.gmra.mxu0 %v1612_v49  ;;  %v644_v54 = vmax.f32 %v574_v51, 0.0 }
 0x114   : > { %v575_v52 = vpop.f32.mrf.mxu0 }
 0x115   : > { %v576_v53 = vadd.f32 %v2222_v26, %v575_v52 }
 0x117   : > { %v645_v55 = vmax.f32 %v576_v53, 0.0 }
 0x119   : > { %v673_v56 = vpack.c.bf16 %v645_v55, %v644_v54 }
 0x11b   : > { %775 = vmatmul.bf16.gmra.mxu1 %v673_v56 }
 0x11c   : > { %v578_v58 = vpop.f32.mrf.mxu0 }
 0x11d   : > { %v579_v59 = vadd.f32 %v2222_v26, %v578_v58 }
 0x11f   : > { %617 = vmatmul.bf16.gmra.mxu0 %v1613_v57  ;;  %v646_v62 = vmax.f32 %v579_v59, 0.0 }
 0x124   : > { %v580_v60 = vpop.f32.mrf.mxu0 }
 0x125   : > { %v581_v61 = vadd.f32 %v2222_v26, %v580_v60 }
 0x127   : > { %v647_v63 = vmax.f32 %v581_v61, 0.0 }
 0x129   : > { %v674_v0 = vpack.c.bf16 %v647_v63, %v646_v62 }
 0x12b   : > { %780 = vmatmul.bf16.gmra.mxu1 %v674_v0 }
 0x12c   : > { %v583_v2 = vpop.f32.mrf.mxu0 }
 0x12d   : > { %v584_v3 = vadd.f32 %v2222_v26, %v583_v2 }
 0x12f   : > { %622 = vmatmul.bf16.gmra.mxu0 %v1614_v1  ;;  %v648_v7 = vmax.f32 %v584_v3, 0.0 }
 0x134   : > { %v585_v4 = vpop.f32.mrf.mxu0 }
 0x135   : > { %v586_v6 = vadd.f32 %v2222_v26, %v585_v4 }
 0x137   : > { %v649_v8 = vmax.f32 %v586_v6, 0.0 }
 0x139   : > { %v675_v10 = vpack.c.bf16 %v649_v8, %v648_v7 }
 0x13b   : > { %785 = vmatmul.bf16.gmra.mxu1 %v675_v10 }
 0x13c   : > { %v588_v12 = vpop.f32.mrf.mxu0 }
 0x13d   : > { %v589_v15 = vadd.f32 %v2222_v26, %v588_v12 }
 0x13f   : > { %627 = vmatmul.bf16.gmra.mxu0 %v1615_v11  ;;  %v650_v19 = vmax.f32 %v589_v15, 0.0 }
 0x144   : > { %v590_v16 = vpop.f32.mrf.mxu0 }
 0x145   : > { %v591_v18 = vadd.f32 %v2222_v26, %v590_v16 }
 0x147   : > { %v651_v20 = vmax.f32 %v591_v18, 0.0 }
 0x149   : > { %v676_v22 = vpack.c.bf16 %v651_v20, %v650_v19 }
 0x14b   : > { %790 = vmatmul.bf16.gmra.mxu1 %v676_v22 }
 0x14c   : > { %v593_v24 = vpop.f32.mrf.mxu0 }
 0x14d   : > { %v594_v28 = vadd.f32 %v2222_v26, %v593_v24 }
 0x14f   : > { %632 = vmatmul.bf16.gmra.mxu0 %v1616_v23  ;;  %v652_v31 = vmax.f32 %v594_v28, 0.0 }
 0x154   : > { %v595_v29 = vpop.f32.mrf.mxu0 }
 0x155   : > { %v596_v30 = vadd.f32 %v2222_v26, %v595_v29 }
 0x157   : > { %v653_v32 = vmax.f32 %v596_v30, 0.0 }
 0x159   : > { %v677_v33 = vpack.c.bf16 %v653_v32, %v652_v31 }
 0x15b   : > { %795 = vmatmul.bf16.gmra.mxu1 %v677_v33 }
 0x15c   : > { %v598_v34 = vpop.f32.mrf.mxu0 }
 0x15d   : > { %v599_v35 = vadd.f32 %v2222_v26, %v598_v34 }
 0x15f   : > { %v654_v38 = vmax.f32 %v599_v35, 0.0 }
 0x164   : > { %v600_v36 = vpop.f32.mrf.mxu0 }
 0x165   : > { %v601_v37 = vadd.f32 %v2222_v26, %v600_v36 }
 0x167   : > { %v655_v39 = vmax.f32 %v601_v37, 0.0 }
 0x168   : > { %v761_v40 = vpop.f32.mrf.mxu1 }
 0x169   : > { %v678_v41 = vpack.c.bf16 %v655_v39, %v654_v38  ;;  %v762_v45 = vadd.f32 %v2249_v43, %v761_v40 }
 0x16b   : > { %800 = vmatmul.bf16.gmra.mxu1 %v678_v41 }
 0x16c   : > { %v603_v42 = vpop.f32.mrf.mxu0 }
 0x16d   : > { %v604_v47 = vadd.f32 %v2222_v26, %v603_v42 }
 0x16f   : > { %v656_v51 = vmax.f32 %v604_v47, 0.0 }
 0x170   : > { %v763_v44 = vpop.f32.mrf.mxu1 }
 0x171   : > { %v764_v46 = vadd.f32 %v2249_v43, %v763_v44 }
 0x173   : > { %v841_v48 = vpack.c.bf16 %v764_v46, %v762_v45 }
 0x174   : > { %v605_v49 = vpop.f32.mrf.mxu0 }
 0x175   : > { %v606_v50 = vadd.f32 %v2222_v26, %v605_v49  ;;  %931 = vmatmul.bf16.vlgmr.msra.gmra.mxu2 %v841_v48  ;;  %v1648_v49 = vld [vmem:[#allocation10 + $0x38] sm:$0xff] }
 0x176   : > { %1126 = vmatpush.bf16.msra.mxu3 %v1648_v49 }
 0x177   : > { %v657_v52 = vmax.f32 %v606_v50, 0.0 }
 0x178   : > { %v766_v53 = vpop.f32.mrf.mxu1 }
 0x179   : > { %v679_v54 = vpack.c.bf16 %v657_v52, %v656_v51  ;;  %v767_v57 = vadd.f32 %v2249_v43, %v766_v53 }
 0x17b   : > { %805 = vmatmul.bf16.gmra.mxu1 %v679_v54  ;;  %v1647_v54 = vld [vmem:[#allocation10 + $0x30] sm:$0xff] }
 0x17c   : > { %v608_v55 = vpop.f32.mrf.mxu0  ;;  %1127 = vmatpush.bf16.msra.mxu3 %v1647_v54 }
 0x17d   : > { %v609_v59 = vadd.f32 %v2222_v26, %v608_v55 }
 0x17f   : > { %v658_v63 = vmax.f32 %v609_v59, 0.0 }
 0x180   : > { %v768_v56 = vpop.f32.mrf.mxu1 }
 0x181   : > { %v769_v58 = vadd.f32 %v2249_v43, %v768_v56  ;;  %v1646_v56 = vld [vmem:[#allocation10 + $0x28] sm:$0xff] }
 0x182   : > { %1128 = vmatpush.bf16.msra.mxu3 %v1646_v56 }
 0x183   : > { %v842_v60 = vpack.c.bf16 %v769_v58, %v767_v57 }
 0x184   : > { %v610_v61 = vpop.f32.mrf.mxu0 }
 0x185   : > { %v611_v62 = vadd.f32 %v2222_v26, %v610_v61  ;;  %936 = vmatmul.bf16.gmra.mxu2 %v842_v60  ;;  %v1645_v60 = vld [vmem:[#allocation10 + $0x20] sm:$0xff] }
 0x186   : > { %1129 = vmatpush.bf16.msra.mxu3 %v1645_v60 }
 0x187   : > { %v659_v0 = vmax.f32 %v611_v62, 0.0 }
 0x188   : > { %v771_v1 = vpop.f32.mrf.mxu1 }
 0x189   : > { %v680_v2 = vpack.c.bf16 %v659_v0, %v658_v63  ;;  %v772_v5 = vadd.f32 %v2249_v43, %v771_v1  ;;  %v1644_v1 = vld [vmem:[#allocation10 + $0x18] sm:$0xff] }
 0x18a   : > { %1130 = vmatpush.bf16.msra.mxu3 %v1644_v1 }
 0x18b   : > { %810 = vmatmul.bf16.gmra.mxu1 %v680_v2 }
 0x18c   : > { %v613_v3 = vpop.f32.mrf.mxu0 }
 0x18d   : > { %v614_v7 = vadd.f32 %v2222_v26, %v613_v3 }
 0x18f   : > { %v660_v11 = vmax.f32 %v614_v7, 0.0  ;;  %v1642_v7 = vld [vmem:[#allocation10 + $0x8] sm:$0xff] }
 0x190   : > { %v773_v4 = vpop.f32.mrf.mxu1 }
 0x191   : > { %v774_v6 = vadd.f32 %v2249_v43, %v773_v4 }
 0x193   : > { %v843_v8 = vpack.c.bf16 %v774_v6, %v772_v5  ;;  %v1643_v6 = vld [vmem:[#allocation10 + $0x10] sm:$0xff] }
 0x194   : > { %v615_v9 = vpop.f32.mrf.mxu0  ;;  %1131 = vmatpush.bf16.msra.mxu3 %v1643_v6 }
 0x195   : > { %v616_v10 = vadd.f32 %v2222_v26, %v615_v9  ;;  %941 = vmatmul.bf16.gmra.mxu2 %v843_v8 }
 0x197   : > { %v661_v12 = vmax.f32 %v616_v10, 0.0 }
 0x198   : > { %v776_v13 = vpop.f32.mrf.mxu1  ;;  %1132 = vmatpush.bf16.msra.mxu3 %v1642_v7 }
 0x199   : > { %v681_v14 = vpack.c.bf16 %v661_v12, %v660_v11  ;;  %v777_v17 = vadd.f32 %v2249_v43, %v776_v13  ;;  %v1641_v11 = vld [vmem:[#allocation10] sm:$0xff] }
 0x19b   : > { %815 = vmatmul.bf16.gmra.mxu1 %v681_v14 }
 0x19c   : > { %v618_v15 = vpop.f32.mrf.mxu0  ;;  %1133 = vmatpush.bf16.msra.mxu3 %v1641_v11 }
 0x19d   : > { %v619_v19 = vadd.f32 %v2222_v26, %v618_v15 }
 0x19f   : > { %v662_v23 = vmax.f32 %v619_v19, 0.0  ;;  %v2283_v19 = vld [vmem:[#allocation11 + $0x2] ss:$0 sm:$0xff] }
 0x1a0   : > { %v778_v16 = vpop.f32.mrf.mxu1 }
 0x1a1   : > { %v779_v18 = vadd.f32 %v2249_v43, %v778_v16 }
 0x1a3   : > { %v844_v20 = vpack.c.bf16 %v779_v18, %v777_v17 }
 0x1a4   : > { %v620_v21 = vpop.f32.mrf.mxu0 }
 0x1a5   : > { %v621_v22 = vadd.f32 %v2222_v26, %v620_v21  ;;  %946 = vmatmul.bf16.gmra.mxu2 %v844_v20 }
 0x1a7   : > { %v663_v24 = vmax.f32 %v621_v22, 0.0 }
 0x1a8   : > { %v781_v25 = vpop.f32.mrf.mxu1 }
 0x1a9   : > { %v682_v27 = vpack.c.bf16 %v663_v24, %v662_v23  ;;  %v782_v30 = vadd.f32 %v2249_v43, %v781_v25 }
 0x1ab   : > { %820 = vmatmul.bf16.gmra.mxu1 %v682_v27 }
 0x1ac   : > { %v623_v28 = vpop.f32.mrf.mxu0 }
 0x1ad   : > { %v624_v32 = vadd.f32 %v2222_v26, %v623_v28 }
 0x1af   : > { %v664_v36 = vmax.f32 %v624_v32, 0.0 }
 0x1b0   : > { %v783_v29 = vpop.f32.mrf.mxu1 }
 0x1b1   : > { %v784_v31 = vadd.f32 %v2249_v43, %v783_v29 }
 0x1b3   : > { %v845_v33 = vpack.c.bf16 %v784_v31, %v782_v30 }
 0x1b4   : > { %v625_v34 = vpop.f32.mrf.mxu0 }
 0x1b5   : > { %v626_v35 = vadd.f32 %v2222_v26, %v625_v34  ;;  %951 = vmatmul.bf16.gmra.mxu2 %v845_v33 }
 0x1b7   : > { %v665_v37 = vmax.f32 %v626_v35, 0.0 }
 0x1b8   : > { %v786_v38 = vpop.f32.mrf.mxu1 }
 0x1b9   : > { %v683_v39 = vpack.c.bf16 %v665_v37, %v664_v36  ;;  %v787_v42 = vadd.f32 %v2249_v43, %v786_v38 }
 0x1bb   : > { %825 = vmatmul.bf16.gmra.mxu1 %v683_v39 }
 0x1bc   : > { %v628_v40 = vpop.f32.mrf.mxu0 }
 0x1bd   : > { %v629_v45 = vadd.f32 %v2222_v26, %v628_v40 }
 0x1bf   : > { %v666_v50 = vmax.f32 %v629_v45, 0.0 }
 0x1c0   : > { %v788_v41 = vpop.f32.mrf.mxu1 }
 0x1c1   : > { %v789_v44 = vadd.f32 %v2249_v43, %v788_v41 }
 0x1c3   : > { %v846_v46 = vpack.c.bf16 %v789_v44, %v787_v42 }
 0x1c4   : > { %v630_v47 = vpop.f32.mrf.mxu0 }
 0x1c5   : > { %v631_v48 = vadd.f32 %v2222_v26, %v630_v47  ;;  %956 = vmatmul.bf16.gmra.mxu2 %v846_v46 }
 0x1c7   : > { %v667_v51 = vmax.f32 %v631_v48, 0.0 }
 0x1c8   : > { %v791_v52 = vpop.f32.mrf.mxu1 }
 0x1c9   : > { %v684_v53 = vpack.c.bf16 %v667_v51, %v666_v50  ;;  %v792_v58 = vadd.f32 %v2249_v43, %v791_v52 }
 0x1cb   : > { %830 = vmatmul.bf16.gmra.mxu1 %v684_v53 }
 0x1cc   : > { %v633_v55 = vpop.f32.mrf.mxu0 }
 0x1cd   : > { %v634_v61 = vadd.f32 %v2222_v26, %v633_v55 }
 0x1cf   : > { %v668_v2 = vmax.f32 %v634_v61, 0.0 }
 0x1d0   : > { %v793_v57 = vpop.f32.mrf.mxu1 }
 0x1d1   : > { %v794_v59 = vadd.f32 %v2249_v43, %v793_v57 }
 0x1d3   : > { %v847_v62 = vpack.c.bf16 %v794_v59, %v792_v58 }
 0x1d4   : > { %v635_v63 = vpop.f32.mrf.mxu0 }
 0x1d5   : > { %v636_v0 = vadd.f32 %v2222_v26, %v635_v63  ;;  %961 = vmatmul.bf16.gmra.mxu2 %v847_v62 }
 0x1d7   : > { %v669_v3 = vmax.f32 %v636_v0, 0.0 }
 0x1d8   : > { %v796_v4 = vpop.f32.mrf.mxu1 }
 0x1d9   : > { %v685_v5 = vpack.c.bf16 %v669_v3, %v668_v2  ;;  %v797_v9 = vadd.f32 %v2249_v43, %v796_v4 }
 0x1db   : > { %835 = vmatmul.bf16.gmra.mxu1 %v685_v5 }
 0x1e0   : > { %v798_v8 = vpop.f32.mrf.mxu1 }
 0x1e1   : > { %v799_v10 = vadd.f32 %v2249_v43, %v798_v8 }
 0x1e3   : > { %v848_v12 = vpack.c.bf16 %v799_v10, %v797_v9 }
 0x1e5   : > { %966 = vmatmul.bf16.gmra.mxu2 %v848_v12 }
 0x1e8   : > { %v801_v26 = vpop.f32.mrf.mxu1 }
 0x1e9   : > { %v802_v14 = vadd.f32 %v2249_v43, %v801_v26 }
 0x1f0   : > { %v803_v13 = vpop.f32.mrf.mxu1 }
 0x1f1   : > { %v804_v15 = vadd.f32 %v2249_v43, %v803_v13 }
 0x1f3   : > { %v849_v16 = vpack.c.bf16 %v804_v15, %v802_v14 }
 0x1f5   : > { %971 = vmatmul.bf16.gmra.mxu2 %v849_v16 }
 0x1f8   : > { %v806_v17 = vpop.f32.mrf.mxu1  ;;  %v932_v18 = vpop.f32.mrf.mxu2 }
 0x1f9   : > { %v933_v20 = vadd.f32 %v2283_v19, %v932_v18  ;;  %v807_v23 = vadd.f32 %v2249_v43, %v806_v17 }
 0x1fb   : > { %v1012_v27 = vmax.f32 %v933_v20, 0.0 }
 0x200   : > { %v808_v21 = vpop.f32.mrf.mxu1  ;;  %v934_v22 = vpop.f32.mrf.mxu2 }
 0x201   : > { %v809_v24 = vadd.f32 %v2249_v43, %v808_v21  ;;  %v935_v25 = vadd.f32 %v2283_v19, %v934_v22 }
 0x203   : > { %v1013_v28 = vmax.f32 %v935_v25, 0.0  ;;  %v850_v29 = vpack.c.bf16 %v809_v24, %v807_v23 }
 0x205   : > { %976 = vmatmul.bf16.gmra.mxu2 %v850_v29  ;;  %v1044_v30 = vpack.c.bf16 %v1013_v28, %v1012_v27 }
 0x207   : > { %1134 = vmatmul.bf16.vlgmr.msra.gmra.mxu3 %v1044_v30 }
 0x208   : > { %v811_v31 = vpop.f32.mrf.mxu1  ;;  %v937_v32 = vpop.f32.mrf.mxu2 }
 0x209   : > { %v938_v33 = vadd.f32 %v2283_v19, %v937_v32  ;;  %v812_v36 = vadd.f32 %v2249_v43, %v811_v31 }
 0x20b   : > { %v1014_v39 = vmax.f32 %v938_v33, 0.0 }
 0x210   : > { %v813_v34 = vpop.f32.mrf.mxu1  ;;  %v939_v35 = vpop.f32.mrf.mxu2 }
 0x211   : > { %v814_v37 = vadd.f32 %v2249_v43, %v813_v34  ;;  %v940_v38 = vadd.f32 %v2283_v19, %v939_v35 }
 0x213   : > { %v1015_v40 = vmax.f32 %v940_v38, 0.0  ;;  %v851_v41 = vpack.c.bf16 %v814_v37, %v812_v36 }
 0x215   : > { %981 = vmatmul.bf16.gmra.mxu2 %v851_v41  ;;  %v1045_v42 = vpack.c.bf16 %v1015_v40, %v1014_v39 }
 0x217   : > { %1139 = vmatmul.bf16.gmra.mxu3 %v1045_v42 }
 0x218   : > { %v816_v44 = vpop.f32.mrf.mxu1  ;;  %v942_v45 = vpop.f32.mrf.mxu2 }
 0x219   : > { %v943_v46 = vadd.f32 %v2283_v19, %v942_v45  ;;  %v817_v49 = vadd.f32 %v2249_v43, %v816_v44 }
 0x21b   : > { %v1016_v52 = vmax.f32 %v943_v46, 0.0 }
 0x220   : > { %v818_v47 = vpop.f32.mrf.mxu1  ;;  %v944_v48 = vpop.f32.mrf.mxu2 }
 0x221   : > { %v819_v50 = vadd.f32 %v2249_v43, %v818_v47  ;;  %v945_v51 = vadd.f32 %v2283_v19, %v944_v48 }
 0x223   : > { %v1017_v53 = vmax.f32 %v945_v51, 0.0  ;;  %v852_v54 = vpack.c.bf16 %v819_v50, %v817_v49 }
 0x225   : > { %986 = vmatmul.bf16.gmra.mxu2 %v852_v54  ;;  %v1046_v55 = vpack.c.bf16 %v1017_v53, %v1016_v52 }
 0x227   : > { %1144 = vmatmul.bf16.gmra.mxu3 %v1046_v55  ;;  %v2318_v55 = vld [vmem:[#allocation11 + $0x3] ss:$0 sm:$0xff] }
 0x228   : > { %v821_v56 = vpop.f32.mrf.mxu1  ;;  %v947_v57 = vpop.f32.mrf.mxu2 }
 0x229   : > { %v948_v58 = vadd.f32 %v2283_v19, %v947_v57  ;;  %v822_v61 = vadd.f32 %v2249_v43, %v821_v56 }
 0x22b   : > { %v1018_v0 = vmax.f32 %v948_v58, 0.0 }
 0x230   : > { %v823_v59 = vpop.f32.mrf.mxu1  ;;  %v949_v60 = vpop.f32.mrf.mxu2 }
 0x231   : > { %v824_v62 = vadd.f32 %v2249_v43, %v823_v59  ;;  %v950_v63 = vadd.f32 %v2283_v19, %v949_v60 }
 0x233   : > { %v853_v1 = vpack.c.bf16 %v824_v62, %v822_v61  ;;  %v1019_v2 = vmax.f32 %v950_v63, 0.0 }
 0x235   : > { %991 = vmatmul.bf16.gmra.mxu2 %v853_v1  ;;  %v1047_v3 = vpack.c.bf16 %v1019_v2, %v1018_v0 }
 0x237   : > { %1149 = vmatmul.bf16.gmra.mxu3 %v1047_v3 }
 0x238   : > { %v826_v4 = vpop.f32.mrf.mxu1  ;;  %v952_v5 = vpop.f32.mrf.mxu2 }
 0x239   : > { %v953_v6 = vadd.f32 %v2283_v19, %v952_v5  ;;  %v827_v9 = vadd.f32 %v2249_v43, %v826_v4 }
 0x23b   : > { %v1020_v12 = vmax.f32 %v953_v6, 0.0 }
 0x240   : > { %v828_v7 = vpop.f32.mrf.mxu1  ;;  %v954_v8 = vpop.f32.mrf.mxu2 }
 0x241   : > { %v829_v10 = vadd.f32 %v2249_v43, %v828_v7  ;;  %v955_v11 = vadd.f32 %v2283_v19, %v954_v8 }
 0x243   : > { %v854_v26 = vpack.c.bf16 %v829_v10, %v827_v9  ;;  %v1021_v13 = vmax.f32 %v955_v11, 0.0 }
 0x245   : > { %996 = vmatmul.bf16.gmra.mxu2 %v854_v26  ;;  %v1048_v14 = vpack.c.bf16 %v1021_v13, %v1020_v12 }
 0x247   : > { %1154 = vmatmul.bf16.gmra.mxu3 %v1048_v14 }
 0x248   : > { %v831_v15 = vpop.f32.mrf.mxu1  ;;  %v957_v16 = vpop.f32.mrf.mxu2 }
 0x249   : > { %v958_v17 = vadd.f32 %v2283_v19, %v957_v16  ;;  %v832_v21 = vadd.f32 %v2249_v43, %v831_v15 }
 0x24b   : > { %v1022_v24 = vmax.f32 %v958_v17, 0.0 }
 0x250   : > { %v833_v18 = vpop.f32.mrf.mxu1  ;;  %v959_v20 = vpop.f32.mrf.mxu2 }
 0x251   : > { %v834_v22 = vadd.f32 %v2249_v43, %v833_v18  ;;  %v960_v23 = vadd.f32 %v2283_v19, %v959_v20 }
 0x253   : > { %v855_v25 = vpack.c.bf16 %v834_v22, %v832_v21  ;;  %v1023_v27 = vmax.f32 %v960_v23, 0.0 }
 0x255   : > { %1001 = vmatmul.bf16.gmra.mxu2 %v855_v25  ;;  %v1049_v28 = vpack.c.bf16 %v1023_v27, %v1022_v24 }
 0x257   : > { %1159 = vmatmul.bf16.gmra.mxu3 %v1049_v28 }
 0x258   : > { %v836_v29 = vpop.f32.mrf.mxu1  ;;  %v962_v30 = vpop.f32.mrf.mxu2 }
 0x259   : > { %v963_v31 = vadd.f32 %v2283_v19, %v962_v30  ;;  %v837_v34 = vadd.f32 %v2249_v43, %v836_v29 }
 0x25b   : > { %v1024_v37 = vmax.f32 %v963_v31, 0.0 }
 0x260   : > { %v838_v32 = vpop.f32.mrf.mxu1  ;;  %v964_v33 = vpop.f32.mrf.mxu2 }
 0x261   : > { %v839_v35 = vadd.f32 %v2249_v43, %v838_v32  ;;  %v965_v36 = vadd.f32 %v2283_v19, %v964_v33 }
 0x263   : > { %v856_v38 = vpack.c.bf16 %v839_v35, %v837_v34  ;;  %v1025_v39 = vmax.f32 %v965_v36, 0.0 }
 0x265   : > { %1006 = vmatmul.bf16.gmra.mxu2 %v856_v38  ;;  %v1050_v40 = vpack.c.bf16 %v1025_v39, %v1024_v37 }
 0x267   : > { %1164 = vmatmul.bf16.gmra.mxu3 %v1050_v40 }
 0x268   : > { %v967_v41 = vpop.f32.mrf.mxu2 }
 0x269   : > { %v968_v42 = vadd.f32 %v2283_v19, %v967_v41 }
 0x26b   : > { %v1026_v46 = vmax.f32 %v968_v42, 0.0 }
 0x270   : > { %v969_v44 = vpop.f32.mrf.mxu2 }
 0x271   : > { %v970_v45 = vadd.f32 %v2283_v19, %v969_v44 }
 0x273   : > { %v1027_v47 = vmax.f32 %v970_v45, 0.0 }
 0x275   : > { %v1051_v48 = vpack.c.bf16 %v1027_v47, %v1026_v46 }
 0x277   : > { %1169 = vmatmul.bf16.gmra.mxu3 %v1051_v48 }
 0x278   : > { %v972_v43 = vpop.f32.mrf.mxu2 }
 0x279   : > { %v973_v49 = vadd.f32 %v2283_v19, %v972_v43 }
 0x27b   : > { %v1028_v52 = vmax.f32 %v973_v49, 0.0 }
 0x280   : > { %v974_v50 = vpop.f32.mrf.mxu2 }
 0x281   : > { %v975_v51 = vadd.f32 %v2283_v19, %v974_v50 }
 0x283   : > { %v1029_v53 = vmax.f32 %v975_v51, 0.0 }
 0x285   : > { %v1052_v54 = vpack.c.bf16 %v1029_v53, %v1028_v52 }
 0x287   : > { %1174 = vmatmul.bf16.gmra.mxu3 %v1052_v54 }
 0x288   : > { %v977_v56 = vpop.f32.mrf.mxu2 }
 0x289   : > { %v978_v59 = vadd.f32 %v2283_v19, %v977_v56 }
 0x28a   : > { %v1135_v57 = vpop.f32.mrf.mxu3 }
 0x28b   : > { %v1136_v58 = vadd.f32 %v2318_v55, %v1135_v57  ;;  %v1030_v63 = vmax.f32 %v978_v59, 0.0 }
 0x28d   : > { %1215 = vst [vmem:[%s2321_s11] sm:$0xff] %v1136_v58 }
 0x290   : > { %v979_v60 = vpop.f32.mrf.mxu2 }
 0x291   : > { %v980_v61 = vadd.f32 %v2283_v19, %v979_v60 }
 0x292   : > { %v1137_v62 = vpop.f32.mrf.mxu3 }
 0x293   : > { %v1031_v0 = vmax.f32 %v980_v61, 0.0  ;;  %v1138_v1 = vadd.f32 %v2318_v55, %v1137_v62 }
 0x295   : > { %1216 = vst [vmem:[%s2321_s11 + $0x8] sm:$0xff] %v1138_v1  ;;  %v1053_v2 = vpack.c.bf16 %v1031_v0, %v1030_v63 }
 0x297   : > { %1179 = vmatmul.bf16.gmra.mxu3 %v1053_v2 }
 0x298   : > { %v982_v3 = vpop.f32.mrf.mxu2 }
 0x299   : > { %v983_v6 = vadd.f32 %v2283_v19, %v982_v3 }
 0x29a   : > { %v1140_v4 = vpop.f32.mrf.mxu3 }
 0x29b   : > { %v1141_v5 = vadd.f32 %v2318_v55, %v1140_v4  ;;  %v1032_v10 = vmax.f32 %v983_v6, 0.0 }
 0x29d   : > { %1217 = vst [vmem:[%s2321_s11 + $0x10] sm:$0xff] %v1141_v5 }
 0x2a0   : > { %v984_v7 = vpop.f32.mrf.mxu2 }
 0x2a1   : > { %v985_v8 = vadd.f32 %v2283_v19, %v984_v7 }
 0x2a2   : > { %v1142_v9 = vpop.f32.mrf.mxu3 }
 0x2a3   : > { %v1033_v11 = vmax.f32 %v985_v8, 0.0  ;;  %v1143_v12 = vadd.f32 %v2318_v55, %v1142_v9 }
 0x2a5   : > { %1218 = vst [vmem:[%s2321_s11 + $0x18] sm:$0xff] %v1143_v12  ;;  %v1054_v26 = vpack.c.bf16 %v1033_v11, %v1032_v10 }
 0x2a7   : > { %1184 = vmatmul.bf16.gmra.mxu3 %v1054_v26 }
 0x2a8   : > { %v987_v13 = vpop.f32.mrf.mxu2 }
 0x2a9   : > { %v988_v16 = vadd.f32 %v2283_v19, %v987_v13 }
 0x2aa   : > { %v1145_v14 = vpop.f32.mrf.mxu3 }
 0x2ab   : > { %v1146_v15 = vadd.f32 %v2318_v55, %v1145_v14  ;;  %v1034_v21 = vmax.f32 %v988_v16, 0.0 }
 0x2ad   : > { %1219 = vst [vmem:[%s2321_s11 + $0x20] sm:$0xff] %v1146_v15 }
 0x2b0   : > { %v989_v17 = vpop.f32.mrf.mxu2 }
 0x2b1   : > { %v990_v18 = vadd.f32 %v2283_v19, %v989_v17 }
 0x2b2   : > { %v1147_v20 = vpop.f32.mrf.mxu3 }
 0x2b3   : > { %v1035_v22 = vmax.f32 %v990_v18, 0.0  ;;  %v1148_v23 = vadd.f32 %v2318_v55, %v1147_v20 }
 0x2b5   : > { %1220 = vst [vmem:[%s2321_s11 + $0x28] sm:$0xff] %v1148_v23  ;;  %v1055_v24 = vpack.c.bf16 %v1035_v22, %v1034_v21 }
 0x2b7   : > { %1189 = vmatmul.bf16.gmra.mxu3 %v1055_v24 }
 0x2b8   : > { %v992_v25 = vpop.f32.mrf.mxu2 }
 0x2b9   : > { %v993_v29 = vadd.f32 %v2283_v19, %v992_v25 }
 0x2ba   : > { %v1150_v27 = vpop.f32.mrf.mxu3 }
 0x2bb   : > { %v1151_v28 = vadd.f32 %v2318_v55, %v1150_v27  ;;  %v1036_v33 = vmax.f32 %v993_v29, 0.0 }
 0x2bd   : > { %1221 = vst [vmem:[%s2321_s11 + $0x30] sm:$0xff] %v1151_v28 }
 0x2c0   : > { %v994_v30 = vpop.f32.mrf.mxu2 }
 0x2c1   : > { %v995_v31 = vadd.f32 %v2283_v19, %v994_v30 }
 0x2c2   : > { %v1152_v32 = vpop.f32.mrf.mxu3 }
 0x2c3   : > { %v1037_v34 = vmax.f32 %v995_v31, 0.0  ;;  %v1153_v35 = vadd.f32 %v2318_v55, %v1152_v32 }
 0x2c5   : > { %v1056_v36 = vpack.c.bf16 %v1037_v34, %v1036_v33  ;;  %1222 = vst [vmem:[%s2321_s11 + $0x38] sm:$0xff] %v1153_v35 }
 0x2c7   : > { %1194 = vmatmul.bf16.gmra.mxu3 %v1056_v36 }
 0x2c8   : > { %v997_v37 = vpop.f32.mrf.mxu2 }
 0x2c9   : > { %v998_v40 = vadd.f32 %v2283_v19, %v997_v37 }
 0x2ca   : > { %v1155_v38 = vpop.f32.mrf.mxu3 }
 0x2cb   : > { %v1156_v39 = vadd.f32 %v2318_v55, %v1155_v38  ;;  %v1038_v45 = vmax.f32 %v998_v40, 0.0 }
 0x2cd   : > { %1223 = vst [vmem:[%s2321_s11 + $0x40] sm:$0xff] %v1156_v39 }
 0x2d0   : > { %v999_v41 = vpop.f32.mrf.mxu2 }
 0x2d1   : > { %v1000_v42 = vadd.f32 %v2283_v19, %v999_v41 }
 0x2d2   : > { %v1157_v44 = vpop.f32.mrf.mxu3 }
 0x2d3   : > { %v1039_v46 = vmax.f32 %v1000_v42, 0.0  ;;  %v1158_v47 = vadd.f32 %v2318_v55, %v1157_v44 }
 0x2d5   : > { %v1057_v48 = vpack.c.bf16 %v1039_v46, %v1038_v45  ;;  %1224 = vst [vmem:[%s2321_s11 + $0x48] sm:$0xff] %v1158_v47 }
 0x2d7   : > { %1199 = vmatmul.bf16.gmra.mxu3 %v1057_v48 }
 0x2d8   : > { %v1002_v43 = vpop.f32.mrf.mxu2 }
 0x2d9   : > { %v1003_v51 = vadd.f32 %v2283_v19, %v1002_v43 }
 0x2da   : > { %v1160_v49 = vpop.f32.mrf.mxu3 }
 0x2db   : > { %v1161_v50 = vadd.f32 %v2318_v55, %v1160_v49  ;;  %v1040_v56 = vmax.f32 %v1003_v51, 0.0 }
 0x2dd   : > { %1225 = vst [vmem:[%s2321_s11 + $0x50] sm:$0xff] %v1161_v50 }
 0x2e0   : > { %v1004_v52 = vpop.f32.mrf.mxu2 }
 0x2e1   : > { %v1005_v53 = vadd.f32 %v2283_v19, %v1004_v52 }
 0x2e2   : > { %v1162_v54 = vpop.f32.mrf.mxu3 }
 0x2e3   : > { %v1041_v57 = vmax.f32 %v1005_v53, 0.0  ;;  %v1163_v58 = vadd.f32 %v2318_v55, %v1162_v54 }
 0x2e5   : > { %v1058_v59 = vpack.c.bf16 %v1041_v57, %v1040_v56  ;;  %1226 = vst [vmem:[%s2321_s11 + $0x58] sm:$0xff] %v1163_v58 }
 0x2e7   : > { %1204 = vmatmul.bf16.gmra.mxu3 %v1058_v59 }
 0x2e8   : > { %v1007_v60 = vpop.f32.mrf.mxu2 }
 0x2e9   : > { %v1008_v63 = vadd.f32 %v2283_v19, %v1007_v60 }
 0x2ea   : > { %v1165_v61 = vpop.f32.mrf.mxu3 }
 0x2eb   : > { %v1166_v62 = vadd.f32 %v2318_v55, %v1165_v61  ;;  %v1042_v3 = vmax.f32 %v1008_v63, 0.0 }
 0x2ed   : > { %1227 = vst [vmem:[%s2321_s11 + $0x60] sm:$0xff] %v1166_v62 }
 0x2f0   : > { %v1009_v0 = vpop.f32.mrf.mxu2 }
 0x2f1   : > { %v1010_v1 = vadd.f32 %v2283_v19, %v1009_v0 }
 0x2f2   : > { %v1167_v2 = vpop.f32.mrf.mxu3 }
 0x2f3   : > { %v1043_v4 = vmax.f32 %v1010_v1, 0.0  ;;  %v1168_v5 = vadd.f32 %v2318_v55, %v1167_v2 }
 0x2f5   : > { %v1059_v6 = vpack.c.bf16 %v1043_v4, %v1042_v3  ;;  %1228 = vst [vmem:[%s2321_s11 + $0x68] sm:$0xff] %v1168_v5 }
 0x2f7   : > { %1209 = vmatmul.bf16.gmra.mxu3 %v1059_v6 }
 0x2fa   : > { %v1170_v7 = vpop.f32.mrf.mxu3 }
 0x2fb   : > { %v1171_v8 = vadd.f32 %v2318_v55, %v1170_v7 }
 0x2fd   : > { %1229 = vst [vmem:[%s2321_s11 + $0x70] sm:$0xff] %v1171_v8 }
 0x302   : > { %v1172_v9 = vpop.f32.mrf.mxu3 }
 0x303   : > { %v1173_v10 = vadd.f32 %v2318_v55, %v1172_v9 }
 0x305   : > { %1230 = vst [vmem:[%s2321_s11 + $0x78] sm:$0xff] %v1173_v10 }
 0x30a   : > { %v1175_v19 = vpop.f32.mrf.mxu3 }
 0x30b   : > { %v1176_v11 = vadd.f32 %v2318_v55, %v1175_v19 }
 0x30d   : > { %1231 = vst [vmem:[%s2321_s11 + $0x80] sm:$0xff] %v1176_v11 }
 0x312   : > { %v1177_v12 = vpop.f32.mrf.mxu3 }
 0x313   : > { %v1178_v26 = vadd.f32 %v2318_v55, %v1177_v12 }
 0x315   : > { %1232 = vst [vmem:[%s2321_s11 + $0x88] sm:$0xff] %v1178_v26 }
 0x31a   : > { %v1180_v13 = vpop.f32.mrf.mxu3 }
 0x31b   : > { %v1181_v14 = vadd.f32 %v2318_v55, %v1180_v13 }
 0x31d   : > { %1233 = vst [vmem:[%s2321_s11 + $0x90] sm:$0xff] %v1181_v14 }
 0x322   : > { %v1182_v15 = vpop.f32.mrf.mxu3 }
 0x323   : > { %v1183_v16 = vadd.f32 %v2318_v55, %v1182_v15 }
 0x325   : > { %1234 = vst [vmem:[%s2321_s11 + $0x98] sm:$0xff] %v1183_v16 }
 0x32a   : > { %v1185_v17 = vpop.f32.mrf.mxu3 }
 0x32b   : > { %v1186_v18 = vadd.f32 %v2318_v55, %v1185_v17 }
 0x32d   : > { %1235 = vst [vmem:[%s2321_s11 + $0xa0] sm:$0xff] %v1186_v18 }
 0x332   : > { %v1187_v20 = vpop.f32.mrf.mxu3 }
 0x333   : > { %v1188_v21 = vadd.f32 %v2318_v55, %v1187_v20 }
 0x335   : > { %1236 = vst [vmem:[%s2321_s11 + $0xa8] sm:$0xff] %v1188_v21 }
 0x33a   : > { %v1190_v22 = vpop.f32.mrf.mxu3 }
 0x33b   : > { %v1191_v23 = vadd.f32 %v2318_v55, %v1190_v22 }
 0x33d   : > { %1237 = vst [vmem:[%s2321_s11 + $0xb0] sm:$0xff] %v1191_v23 }
 0x342   : > { %v1192_v24 = vpop.f32.mrf.mxu3 }
 0x343   : > { %v1193_v25 = vadd.f32 %v2318_v55, %v1192_v24 }
 0x345   : > { %1238 = vst [vmem:[%s2321_s11 + $0xb8] sm:$0xff] %v1193_v25 }
 0x34a   : > { %v1195_v27 = vpop.f32.mrf.mxu3 }
 0x34b   : > { %v1196_v28 = vadd.f32 %v2318_v55, %v1195_v27 }
 0x34d   : > { %1239 = vst [vmem:[%s2321_s11 + $0xc0] sm:$0xff] %v1196_v28 }
 0x352   : > { %v1197_v29 = vpop.f32.mrf.mxu3 }
 0x353   : > { %v1198_v30 = vadd.f32 %v2318_v55, %v1197_v29 }
 0x355   : > { %1240 = vst [vmem:[%s2321_s11 + $0xc8] sm:$0xff] %v1198_v30 }
 0x35a   : > { %v1200_v31 = vpop.f32.mrf.mxu3 }
 0x35b   : > { %v1201_v32 = vadd.f32 %v2318_v55, %v1200_v31 }
 0x35d   : > { %1241 = vst [vmem:[%s2321_s11 + $0xd0] sm:$0xff] %v1201_v32 }
 0x362   : > { %v1202_v33 = vpop.f32.mrf.mxu3 }
 0x363   : > { %v1203_v34 = vadd.f32 %v2318_v55, %v1202_v33 }
 0x365   : > { %1242 = vst [vmem:[%s2321_s11 + $0xd8] sm:$0xff] %v1203_v34 }
 0x36a   : > { %v1205_v35 = vpop.f32.mrf.mxu3 }
 0x36b   : > { %v1206_v36 = vadd.f32 %v2318_v55, %v1205_v35 }
 0x36d   : > { %1243 = vst [vmem:[%s2321_s11 + $0xe0] sm:$0xff] %v1206_v36 }
 0x372   : > { %v1207_v37 = vpop.f32.mrf.mxu3 }
 0x373   : > { %v1208_v38 = vadd.f32 %v2318_v55, %v1207_v37 }
 0x375   : > { %1244 = vst [vmem:[%s2321_s11 + $0xe8] sm:$0xff] %v1208_v38 }
 0x37a   : > { %v1210_v39 = vpop.f32.mrf.mxu3 }
 0x37b   : > { %v1211_v40 = vadd.f32 %v2318_v55, %v1210_v39 }
 0x37d   : > { %1245 = vst [vmem:[%s2321_s11 + $0xf0] sm:$0xff] %v1211_v40 }
 0x382   : > { %v1212_v41 = vpop.f32.mrf.mxu3 }
 0x383   : > { %v1213_v42 = vadd.f32 %v2318_v55, %v1212_v41 }
 0x385   : > { %1246 = vst [vmem:[%s2321_s11 + $0xf8] sm:$0xff] %v1213_v42 }
 0x386   : > { %1962 = shalt.err (!%p1959_p9)
}
 0x387   : > { %s2022_s7 = smov 128   ;;  %s2023_s11 = smov 8  }
 0x388   : > { %1672 = dma.vmem_to_hbm [thread:$0]  (%p2157_p13), %s1261_s27, 4096, %s1263_s9, %s1248_s10, %s2022_s7, %s2022_s7, %s2023_s11  }
 0x389 PF: > { %s1277_s12 = sand.u32 1, %s2001_s21   ;;  %p2451_p10 = scmp.ge.s32.totalorder %s2013_s24, 2 }
 0x38a   : > { %s1278_s16 = scalar_lea.sflag [#allocation4], %s1277_s12 }
 0x38b   : > { %p1695_p11 = pnand %p2451_p10, %p2162_p4 }
 0x38d   : > { %p1696_p0 = pneg %p1695_p11 }
 0x38f   : > { %1996 = dma.done.wait (%p1696_p0), %s1278_s16, 4096  }
 0x390   : > { %1998 = vsyncadd (%p1696_p0), %s1278_s16, 4294963200  ;;  %p22_p2 = scmp.ge.s32.totalorder %s2137_s15, 4   ;;  %s2452_s21 = smov %s2005_s22 }
 0x391   : > { %s2453_s22 = smov %s2009_s23  ;;  %s2454_s23 = smov %s2149_s20 }
 0x392   : > { %s2455_s24 = smov %s2137_s15  ;;  %24 = sbr.rel (!%p22_p2) target bundleno = 8 (0x8), region = 109 }
 0x397   :  { %1284 = vsyncpa [#allocation3], 1 }
 0x398   :  { %1286 = vsyncpa [#allocation3 + $0x1], 1 }
 0x399   :  { %1287 = vsyncpa [#allocation6], 1 }
 0x39a   :  { %1288 = vsyncpa [#allocation9], 1 }
 0x39b   :  { %1289 = vsyncpa [#allocation12], 1 }
 0x39c   :  { %1290 = vsyncpa [#allocation4], 1 }
 0x39d   :  { %1292 = vsyncpa [#allocation4 + $0x1], 1 }

</bundles_post_ra>
